<compile_context>
chip_gen: v6e
topology: v6e:2x2x1
jax: 0.10.0
libtpu: 0.0.40
codegen_flags: <defaults>
</compile_context>

<pallas_src>
import functools

import jax
import jax.numpy as jnp
from jax.experimental import pallas as pl
from jax.experimental.pallas import tpu as pltpu

EPS = 1e-5
H1, H2, OUT = 128, 64, 1
LANE = 128


def _round_up(n, m):
    return ((n + m - 1) // m) * m


def _lane_tile_sum(a):
    """Sum an (R, k*128) array over its 128-lane tiles -> (R, 128).
    Slices are vreg-aligned, so this lowers to plain VALU adds (no XLU)."""
    _, c = a.shape
    acc = a[:, 0:LANE]
    for k in range(1, c // LANE):
        acc = acc + a[:, k * LANE:(k + 1) * LANE]
    return acc


# ---------------------------------------------------------------------------
# Phase 1: per-feature sum / sum-of-squares of h1^T = w1^T @ x^T over the batch.
# Grid = (num_splits "parallel", tiles_per_split "arbitrary"); each split emits
# its own (H1, 2) partial [sum, sumsq] slab.
# ---------------------------------------------------------------------------
def stats_kernel(xt_ref, w1t_ref, stats_ref, sum_acc, sq_acc):
    i = pl.program_id(1)

    @pl.when(i == 0)
    def _init():
        sum_acc[...] = jnp.zeros_like(sum_acc)
        sq_acc[...] = jnp.zeros_like(sq_acc)

    # bf16 MXU inputs, f32 accumulation.  (H1, tile_b): features x batch.
    h1t = jnp.dot(w1t_ref[...], xt_ref[...], preferred_element_type=jnp.float32)
    sum_acc[...] += _lane_tile_sum(h1t)
    sq_acc[...] += _lane_tile_sum(h1t * h1t)

    @pl.when(i == pl.num_programs(1) - 1)
    def _finalize():
        # Single cross-lane (XLU) reduce per kernel instead of one per tile.
        stats_ref[0, :, 0:1] = jnp.sum(sum_acc[...], axis=1, keepdims=True)
        stats_ref[0, :, 1:2] = jnp.sum(sq_acc[...], axis=1, keepdims=True)


# ---------------------------------------------------------------------------
# Phase 2: recompute h1^T per tile, fold BN in-kernel (scale/shift), ReLU,
# fc2, ReLU, out(64->1) as a mul + sublane reduce (f32), sigmoid.
# Output block is (1, tile_b): lane-dense, unmasked stores.
# ---------------------------------------------------------------------------
def apply_kernel(xt_ref, w1t_ref, gamma_ref, beta_ref, stats_ref,
                 w2t_ref, b2_ref, w3_ref, b3_ref, ot_ref, *, inv_b):
    # Fold train-mode BN (biased variance) into scale/shift.  128-wide work
    # (rsqrt goes to the EUP slot); recomputed per tile so it stays correct when
    # the batch axis is sharded across TensorCores ("parallel") -- no scratch deps.
    st = stats_ref[0]                                   # (H1, 2): [sum, sumsq]
    for c in range(1, stats_ref.shape[0]):              # reduce the per-split partials
        st = st + stats_ref[c]
    mean = st[:, 0:1] * inv_b                            # (H1, 1)
    # TODO(synk): for very large batches switch to a centered/Welford variance to
    # avoid E[h^2]-mean^2 cancellation; clamped here and fine at these magnitudes.
    var = jnp.maximum(st[:, 1:2] * inv_b - mean * mean, 0.0)
    scale = gamma_ref[...] * jax.lax.rsqrt(var + EPS)    # (H1, 1)
    shift = beta_ref[...] - mean * scale

    h1t = jnp.dot(w1t_ref[...], xt_ref[...], preferred_element_type=jnp.float32)
    h1t = jnp.maximum(h1t * scale + shift, 0.0)          # folded BN + ReLU, (H1, tile_b)
    h2t = jnp.dot(w2t_ref[...], h1t.astype(jnp.bfloat16),
                  preferred_element_type=jnp.float32) + b2_ref[...]
    h2t = jnp.maximum(h2t, 0.0)                          # (H2, tile_b)
    # out layer (64 -> 1) kept f32: elementwise mul + cross-sublane reduce.
    logits = jnp.sum(h2t * w3_ref[...], axis=0, keepdims=True) + b3_ref[...]
    ot_ref[...] = jax.nn.sigmoid(logits).astype(ot_ref.dtype)   # (1, tile_b)


def batchnorm_mlp(x, params, tile_b=None):
    """x: (B, input_dim) float32 -> (B, 1) float32.  Train-mode BatchNorm."""
    B, d_in = x.shape

    # Batch tile along the lane dimension: multiple of 128, grows with B.
    if tile_b is None:
        tile_b = 2048
    tile_b = min(tile_b, _round_up(B, LANE))
    tile_b = max(LANE, _round_up(tile_b, LANE))

    total_tiles = -(-B // tile_b)
    # Shard the phase-1 reduction across 2 TensorCores (v7x megacore) when there
    # is enough work; on 1-TC chips (v5e/v6e) the extra axis is just an outer loop.
    num_splits = 2 if total_tiles >= 2 else 1
    b_pad = _round_up(B, tile_b * num_splits)
    tiles_per_split = b_pad // (tile_b * num_splits)
    num_tiles = b_pad // tile_b

    # x^T in bf16: single pre-cast, lane-dense batch axis, zero-padded columns are
    # exact (b1 dropped, so padded columns give h1 == 0 and contribute nothing).
    xt = jnp.pad(x.astype(jnp.bfloat16).T, ((0, 0), (0, b_pad - B)))

    w1t = params["w1"].T.astype(jnp.bfloat16)            # (H1, d_in)
    w2t = params["w2"].T.astype(jnp.bfloat16)            # (H2, H1)
    gamma_c = params["gamma"].reshape(H1, 1)             # feature columns
    beta_c = params["beta"].reshape(H1, 1)
    b2_c = params["b2"].reshape(H2, 1)
    w3_c = params["w3"].reshape(H2, 1)                   # final layer stays f32
    b3 = params["b3"].reshape(1, 1)

    def cparams(sems):
        return pltpu.CompilerParams(dimension_semantics=sems,
                                    vmem_limit_bytes=32 * 1024 * 1024)

    # ---- phase 1: batch statistics (per-split partials) ----
    stats = pl.pallas_call(
        stats_kernel,
        out_shape=jax.ShapeDtypeStruct((num_splits, H1, 2), jnp.float32),
        grid_spec=pltpu.PrefetchScalarGridSpec(
            num_scalar_prefetch=0,
            grid=(num_splits, tiles_per_split),
            in_specs=[
                pl.BlockSpec((d_in, tile_b),
                             lambda c, i: (0, c * tiles_per_split + i)),
                pl.BlockSpec((H1, d_in), lambda c, i: (0, 0)),
            ],
            out_specs=pl.BlockSpec((1, H1, 2), lambda c, i: (c, 0, 0)),
            scratch_shapes=[pltpu.VMEM((H1, LANE), jnp.float32),
                            pltpu.VMEM((H1, LANE), jnp.float32)]),
        compiler_params=cparams(("parallel", "arbitrary")),
    )(xt, w1t)

    # ---- phase 2: apply (BN fold happens inside the kernel) ----
    out_t = pl.pallas_call(
        functools.partial(apply_kernel, inv_b=float(1.0 / B)),
        out_shape=jax.ShapeDtypeStruct((1, b_pad), jnp.float32),
        grid_spec=pltpu.PrefetchScalarGridSpec(
            num_scalar_prefetch=0,
            grid=(num_tiles,),
            in_specs=[
                pl.BlockSpec((d_in, tile_b), lambda i: (0, i)),        # x^T tile
                pl.BlockSpec((H1, d_in), lambda i: (0, 0)),            # w1^T (resident)
                pl.BlockSpec((H1, 1), lambda i: (0, 0)),               # gamma
                pl.BlockSpec((H1, 1), lambda i: (0, 0)),               # beta
                pl.BlockSpec((num_splits, H1, 2), lambda i: (0, 0, 0)),  # raw stats
                pl.BlockSpec((H2, H1), lambda i: (0, 0)),              # w2^T (resident)
                pl.BlockSpec((H2, 1), lambda i: (0, 0)),               # b2
                pl.BlockSpec((H2, 1), lambda i: (0, 0)),               # w3
                pl.BlockSpec((1, 1), lambda i: (0, 0)),                # b3
            ],
            out_specs=pl.BlockSpec((1, tile_b), lambda i: (0, i))),
        compiler_params=cparams(("parallel",)),
        cost_estimate=pl.CostEstimate(
            flops=2 * b_pad * (d_in * H1 + H1 * H2 + H2),
            transcendentals=b_pad,
            bytes_accessed=2 * b_pad * d_in + 4 * b_pad
                           + 2 * (d_in * H1 + H1 * H2)
                           + 4 * (num_splits * 2 * H1 + 2 * H1 + 2 * H2 + 1)),
    )(xt, w1t, gamma_c, beta_c, stats, w2t, b2_c, w3_c, b3)

    return out_t[:, :B].T                                # (B, 1)


def init_params(key, input_dim):
    """Deterministic synthetic parameters with the shapes implied by __init__."""
    ks = jax.random.split(key, 8)

    def lin_init(kw, kb, fan_in, fan_out):
        bound = 1.0 / jnp.sqrt(fan_in)
        w = jax.random.uniform(kw, (fan_in, fan_out), jnp.float32, -bound, bound)
        b = jax.random.uniform(kb, (1, fan_out), jnp.float32, -bound, bound)
        return w, b

    w1, b1 = lin_init(ks[0], ks[1], input_dim, H1)
    w2, b2 = lin_init(ks[2], ks[3], H1, H2)
    w3, b3 = lin_init(ks[4], ks[5], H2, OUT)
    gamma = jnp.ones((1, H1), jnp.float32) + 0.1 * jax.random.normal(ks[6], (1, H1))
    beta = 0.1 * jax.random.normal(ks[7], (1, H1))
    # b1 is kept for reference parity but is provably cancelled by BatchNorm,
    # so the kernels never read it.
    return {"w1": w1, "b1": b1, "gamma": gamma, "beta": beta,
            "w2": w2, "b2": b2, "w3": w3, "b3": b3}


def reference_f32(x, p):
    """Pure-f32 PyTorch-equivalent forward (includes b1)."""
    h1 = x @ p["w1"] + p["b1"]
    mean = jnp.mean(h1, axis=0, keepdims=True)
    var = jnp.mean((h1 - mean) ** 2, axis=0, keepdims=True)
    h1 = jax.nn.relu((h1 - mean) / jnp.sqrt(var + EPS) * p["gamma"] + p["beta"])
    h2 = jax.nn.relu(h1 @ p["w2"] + p["b2"])
    return jax.nn.sigmoid(h2 @ p["w3"] + p["b3"])


def reference_bf16(x, p):
    """Same math at the kernel's MXU precision (bf16 inputs, f32 accumulate)."""
    dot = lambda a, b: jnp.dot(a.astype(jnp.bfloat16), b.astype(jnp.bfloat16),
                               preferred_element_type=jnp.float32)
    h1 = dot(x, p["w1"]) + p["b1"]
    mean = jnp.mean(h1, axis=0, keepdims=True)
    var = jnp.mean((h1 - mean) ** 2, axis=0, keepdims=True)
    h1 = jax.nn.relu((h1 - mean) / jnp.sqrt(var + EPS) * p["gamma"] + p["beta"])
    h2 = jax.nn.relu(dot(h1, p["w2"]) + p["b2"])
    return jax.nn.sigmoid(h2 @ p["w3"] + p["b3"])   # final 64->1 layer is f32 in the kernel too


if __name__ == "__main__":
    key = jax.random.PRNGKey(0)
    k_x, k_p, k_x2 = jax.random.split(key, 3)

    input_dim = 16
    params = init_params(k_p, input_dim)

    # Small shapes consistent with the module: batch=8, input_dim=16.
    x = jax.random.normal(k_x, (8, input_dim), jnp.float32)
    out = batchnorm_mlp(x, params)
    jax.block_until_ready(out)
    assert out.shape == (8, 1)
    assert jnp.allclose(out, reference_bf16(x, params), atol=2e-3, rtol=2e-3)
    assert jnp.allclose(out, reference_f32(x, params), atol=3e-2, rtol=3e-2)

    # Multi-tile + ragged batch: exercises the 2-way split of the phase-1 reduction
    # and the multi-tile lane-dense apply path.
    x2 = jax.random.normal(k_x2, (300, input_dim), jnp.float32)
    out2 = batchnorm_mlp(x2, params, tile_b=128)
    jax.block_until_ready(out2)
    assert out2.shape == (300, 1)
    assert jnp.allclose(out2, reference_bf16(x2, params), atol=2e-3, rtol=2e-3)
    assert jnp.allclose(out2, reference_f32(x2, params), atol=3e-2, rtol=3e-2)

    print("KERNEL_OK")
</pallas_src>

<mosaic_0001>
module attributes {stable_mosaic.version = 11 : i64} {
  func.func @stats_kernel(%arg0: i32, %arg1: i32, %arg2: memref<16x128xbf16, #tpu.memory_space<vmem>>, %arg3: memref<128x16xbf16, #tpu.memory_space<vmem>>, %arg4: memref<1x128x2xf32, #tpu.memory_space<vmem>>, %arg5: memref<128x128xf32, #tpu.memory_space<vmem>>, %arg6: memref<128x128xf32, #tpu.memory_space<vmem>>) attributes {dimension_semantics = [#tpu.dimension_semantics<parallel>, #tpu.dimension_semantics<arbitrary>], iteration_bounds = array<i64: 1, 1>, scalar_prefetch = 0 : i64, scratch_operands = 2 : i64, tpu.core_type = #tpu.core_type<tc>, window_params = [{transform_indices = @transform_0, window_bounds = array<i64: 16, 128>}, {pipeline_mode = #tpu.pipeline_mode<synchronous>, transform_indices = @transform_1, window_bounds = array<i64: 128, 16>}, {transform_indices = @transform_2, window_bounds = array<i64: 1, 128, 2>}]} {
    %c0_i32 = arith.constant 0 : i32
    %0 = arith.cmpi eq, %arg1, %c0_i32 : i32
    %1 = arith.extui %0 : i1 to i32
    %c0_i32_0 = arith.constant 0 : i32
    %2 = arith.cmpi ne, %1, %c0_i32_0 : i32
    scf.if %2 {
      %cst_14 = arith.constant 0.000000e+00 : f32
      %16 = vector.broadcast %cst_14 : f32 to vector<128x128xf32>
      %c0_15 = arith.constant 0 : index
      %c0_16 = arith.constant 0 : index
      %17 = vector.load %arg5[%c0_15, %c0_16] : memref<128x128xf32, #tpu.memory_space<vmem>>, vector<128x128xf32>
      tpu.vector_store %arg5[%c0_15, %c0_16], %16 {strides = array<i32>} : memref<128x128xf32, #tpu.memory_space<vmem>>, vector<128x128xf32>,
      %cst_17 = arith.constant 0.000000e+00 : f32
      %18 = vector.broadcast %cst_17 : f32 to vector<128x128xf32>
      %c0_18 = arith.constant 0 : index
      %c0_19 = arith.constant 0 : index
      %19 = vector.load %arg6[%c0_18, %c0_19] : memref<128x128xf32, #tpu.memory_space<vmem>>, vector<128x128xf32>
      tpu.vector_store %arg6[%c0_18, %c0_19], %18 {strides = array<i32>} : memref<128x128xf32, #tpu.memory_space<vmem>>, vector<128x128xf32>,
    } else {
    }
    %c0 = arith.constant 0 : index
    %c0_1 = arith.constant 0 : index
    %3 = vector.load %arg3[%c0, %c0_1] : memref<128x16xbf16, #tpu.memory_space<vmem>>, vector<128x16xbf16>
    %c0_2 = arith.constant 0 : index
    %c0_3 = arith.constant 0 : index
    %4 = vector.load %arg2[%c0_2, %c0_3] : memref<16x128xbf16, #tpu.memory_space<vmem>>, vector<16x128xbf16>
    %cst = arith.constant dense<0.000000e+00> : vector<128x128xf32>
    %5 = tpu.matmul %3, %4, %cst {dimension_numbers = #tpu.dot_dimension_numbers<[1], [0], [0], [1], [0, 0, 1, 1], [], []>} : vector<128x16xbf16>, vector<16x128xbf16>, vector<128x128xf32> -> vector<128x128xf32>
    %c0_4 = arith.constant 0 : index
    %c0_5 = arith.constant 0 : index
    %6 = vector.load %arg5[%c0_4, %c0_5] : memref<128x128xf32, #tpu.memory_space<vmem>>, vector<128x128xf32>
    %7 = arith.addf %6, %5 : vector<128x128xf32>
    %c0_6 = arith.constant 0 : index
    %c0_7 = arith.constant 0 : index
    %8 = vector.load %arg5[%c0_6, %c0_7] : memref<128x128xf32, #tpu.memory_space<vmem>>, vector<128x128xf32>
    tpu.vector_store %arg5[%c0_6, %c0_7], %7 {strides = array<i32>} : memref<128x128xf32, #tpu.memory_space<vmem>>, vector<128x128xf32>,
    %c0_8 = arith.constant 0 : index
    %c0_9 = arith.constant 0 : index
    %9 = vector.load %arg6[%c0_8, %c0_9] : memref<128x128xf32, #tpu.memory_space<vmem>>, vector<128x128xf32>
    %10 = arith.mulf %5, %5 : vector<128x128xf32>
    %11 = arith.addf %9, %10 : vector<128x128xf32>
    %c0_10 = arith.constant 0 : index
    %c0_11 = arith.constant 0 : index
    %12 = vector.load %arg6[%c0_10, %c0_11] : memref<128x128xf32, #tpu.memory_space<vmem>>, vector<128x128xf32>
    tpu.vector_store %arg6[%c0_10, %c0_11], %11 {strides = array<i32>} : memref<128x128xf32, #tpu.memory_space<vmem>>, vector<128x128xf32>,
    %c0_i32_12 = arith.constant 0 : i32
    %13 = arith.cmpi eq, %arg1, %c0_i32_12 : i32
    %14 = arith.extui %13 : i1 to i32
    %c0_i32_13 = arith.constant 0 : i32
    %15 = arith.cmpi ne, %14, %c0_i32_13 : i32
    scf.if %15 {
      %c0_14 = arith.constant 0 : index
      %c0_15 = arith.constant 0 : index
      %16 = vector.load %arg5[%c0_14, %c0_15] : memref<128x128xf32, #tpu.memory_space<vmem>>, vector<128x128xf32>
      %cst_16 = arith.constant dense<0.000000e+00> : vector<128xf32>
      %17 = vector.multi_reduction <add>, %16, %cst_16 [1] : vector<128x128xf32> to vector<128xf32>
      %18 = vector.shape_cast %17 : vector<128xf32> to vector<128x1xf32>
      %c0_17 = arith.constant 0 : index
      %c0_18 = arith.constant 0 : index
      %c0_19 = arith.constant 0 : index
      %19 = vector.load %arg4[%c0_17, %c0_18, %c0_19] : memref<1x128x2xf32, #tpu.memory_space<vmem>>, vector<1x128x1xf32>
      %20 = vector.shape_cast %19 : vector<1x128x1xf32> to vector<128x1xf32>
      %21 = vector.shape_cast %18 : vector<128x1xf32> to vector<1x128x1xf32>
      tpu.vector_store %arg4[%c0_17, %c0_18, %c0_19], %21 {strides = array<i32>} : memref<1x128x2xf32, #tpu.memory_space<vmem>>, vector<1x128x1xf32>,
      %c0_20 = arith.constant 0 : index
      %c0_21 = arith.constant 0 : index
      %22 = vector.load %arg6[%c0_20, %c0_21] : memref<128x128xf32, #tpu.memory_space<vmem>>, vector<128x128xf32>
      %cst_22 = arith.constant dense<0.000000e+00> : vector<128xf32>
      %23 = vector.multi_reduction <add>, %22, %cst_22 [1] : vector<128x128xf32> to vector<128xf32>
      %24 = vector.shape_cast %23 : vector<128xf32> to vector<128x1xf32>
      %c0_23 = arith.constant 0 : index
      %c0_24 = arith.constant 0 : index
      %c1 = arith.constant 1 : index
      %25 = vector.load %arg4[%c0_23, %c0_24, %c1] : memref<1x128x2xf32, #tpu.memory_space<vmem>>, vector<1x128x1xf32>
      %26 = vector.shape_cast %25 : vector<1x128x1xf32> to vector<128x1xf32>
      %27 = vector.shape_cast %24 : vector<128x1xf32> to vector<1x128x1xf32>
      tpu.vector_store %arg4[%c0_23, %c0_24, %c1], %27 {strides = array<i32>} : memref<1x128x2xf32, #tpu.memory_space<vmem>>, vector<1x128x1xf32>,
    } else {
    }
    return
  }
  func.func @transform_0(%arg0: i32, %arg1: i32) -> (i32, i32) {
    %c1_i32 = arith.constant 1 : i32
    %0 = arith.muli %arg0, %c1_i32 : i32
    %1 = arith.addi %0, %arg1 : i32
    %c0_i32 = arith.constant 0 : i32
    %c0_i32_0 = arith.constant 0 : i32
    return %c0_i32, %1 : i32, i32
  }
  func.func @transform_1(%arg0: i32, %arg1: i32) -> (i32, i32) {
    %c0_i32 = arith.constant 0 : i32
    %c0_i32_0 = arith.constant 0 : i32
    %c0_i32_1 = arith.constant 0 : i32
    return %c0_i32, %c0_i32_0 : i32, i32
  }
  func.func @transform_2(%arg0: i32, %arg1: i32) -> (i32, i32, i32) {
    %c0_i32 = arith.constant 0 : i32
    %c0_i32_0 = arith.constant 0 : i32
    %c0_i32_1 = arith.constant 0 : i32
    return %arg0, %c0_i32, %c0_i32_0 : i32, i32, i32
  }
}

</mosaic_0001>

<bundles_post_ra>
// kernel: tpu_custom_call.1
= control target key start
LH: loop header
LB: loop body
LE: loop exit
PB: predicated region body
PF: predicated region fallthrough
CT: control target
= control target key end

     0   :  { %vm129_vm0 = vcmask 130048   ;;  %vm414_vm1 = vcmask 7168   ;;  %vm479_vm2 = vcmask 15368   ;;  %s739_s0 = inlined_call_operand.vmem [shape: bf16[16,128], index: 0, kind: input, shape index: {}]   ;;  %s740_s1 = inlined_call_operand.vmem [shape: bf16[128,16], index: 1, kind: input, shape index: {}]   ;;  %s741_s2 = inlined_call_operand.vmem [shape: f32[1,128,2], index: 2, kind: output, shape index: {}]  }
   0x1   :  { %v552_v0 = vld [vmem:[%s739_s0] sm:$0xff]   ;;  %v555_v3 = vld [vmem:[%s740_s1 + $0x8] sm:$0xff]   ;;  %v557_v5 = vld [vmem:[%s740_s1 + $0x10] sm:$0xff]  }
   0x2   :  { %v553_v1 = vld [vmem:[%s740_s1] sm:$0xff]   ;;  %532 = vmatprep.subr.bf16.mxu0 %v552_v0  ;;  %550 = vmatprep.subr.bf16.mxu1 %v552_v0  ;;  %v556_v4 = vld [vmem:[%s740_s1 + $0x28] sm:$0xff]   ;;  %v559_v6 = vld [vmem:[%s740_s1 + $0x30] sm:$0xff]  }
   0x3   :  { %v554_v2 = vld [vmem:[%s740_s1 + $0x20] sm:$0xff]   ;;  %533 = vmatpush3.bf16.msra.mxu0 %v552_v0  ;;  %551 = vmatpush3.bf16.msra.mxu1 %v552_v0  ;;  %v558_v7 = vld [vmem:[%s740_s1 + $0x18] sm:$0xff]  }
   0x4   :  { %534 = vmatprep.mubr.msk.bf16.mxu0 %vm129_vm0, %v553_v1  ;;  %542 = vmatprep.mubr.msk.bf16.mxu1 %vm129_vm0, %v554_v2  ;;  %v560_v8 = vld [vmem:[%s740_s1 + $0x38] sm:$0xff]  }
   0x6   :  { %535 = vmatmul.mubr.msk.bf16.vlgmr.msra.gmra.mxu0 %vm129_vm0, %v555_v3  ;;  %543 = vmatmul.mubr.msk.bf16.vlgmr.msra.gmra.mxu1 %vm129_vm0, %v556_v4 }
   0x7   :  { %538 = vmatprep.mubr.msk.bf16.mxu0 %vm129_vm0, %v557_v5  ;;  %546 = vmatprep.mubr.msk.bf16.mxu1 %vm129_vm0, %v559_v6 }
   0xe   :  { %539 = vmatmul.mubr.msk.bf16.gmra.mxu0 %vm129_vm0, %v558_v7  ;;  %547 = vmatmul.mubr.msk.bf16.gmra.mxu1 %vm129_vm0, %v560_v8 }
  0xc6   :  { %v536_v9 = vpop.f32.mrf.mxu0  ;;  %v544_v10 = vpop.f32.mrf.mxu1 }
  0xc7   :  { %402 = vadd.xlane.f32.xlu0 %v544_v10  ;;  %386 = vadd.xlane.f32.xlu1 %v536_v9  ;;  %v317_v15 = vmul.f32 %v536_v9, %v536_v9  ;;  %v325_v17 = vmul.f32 %v544_v10, %v544_v10 }
  0xc8   :  { %v188_v11 = vpop.f32.mrf.mxu0  ;;  %v220_v12 = vpop.f32.mrf.mxu1 }
  0xc9   :  { %v315_v19 = vmul.f32 %v188_v11, %v188_v11  ;;  %v323_v22 = vmul.f32 %v220_v12, %v220_v12 }
  0xca   :  { %v537_v13 = vpop.f32.mrf.mxu0  ;;  %v545_v14 = vpop.f32.mrf.mxu1 }
  0xcb   :  { %382 = vadd.xlane.f32.xlu0 %v188_v11  ;;  %388 = vadd.xlane.f32.xlu1 %v537_v13  ;;  %v318_v18 = vmul.f32 %v537_v13, %v537_v13  ;;  %v326_v20 = vmul.f32 %v545_v14, %v545_v14 }
  0xcc   :  { %v223_v16 = vpop.f32.mrf.mxu1  ;;  %v191_v21 = vpop.f32.mrf.mxu0 }
  0xcd   :  { %v316_v23 = vmul.f32 %v191_v21, %v191_v21  ;;  %v324_v25 = vmul.f32 %v223_v16, %v223_v16 }
  0xce   :  { %v540_v24 = vpop.f32.mrf.mxu0  ;;  %v548_v27 = vpop.f32.mrf.mxu1 }
  0xcf   :  { %398 = vadd.xlane.f32.xlu0 %v220_v12  ;;  %404 = vadd.xlane.f32.xlu1 %v545_v14  ;;  %v321_v33 = vmul.f32 %v540_v24, %v540_v24  ;;  %v329_v39 = vmul.f32 %v548_v27, %v548_v27 }
  0xd0   :  { %v204_v26 = vpop.f32.mrf.mxu0  ;;  %v236_v29 = vpop.f32.mrf.mxu1 }
  0xd1   :  { %v319_v36 = vmul.f32 %v204_v26, %v204_v26  ;;  %v327_v38 = vmul.f32 %v236_v29, %v236_v29 }
  0xd2   :  { %v541_v28 = vpop.f32.mrf.mxu0  ;;  %v549_v30 = vpop.f32.mrf.mxu1 }
  0xd3   :  { %451 = vadd.xlane.f32.xlu0 %v317_v15  ;;  %400 = vadd.xlane.f32.xlu1 %v223_v16  ;;  %v322_v34 = vmul.f32 %v541_v28, %v541_v28  ;;  %v330_v40 = vmul.f32 %v549_v30, %v549_v30 }
  0xd4   :  { %v207_v31 = vpop.f32.mrf.mxu0  ;;  %v239_v32 = vpop.f32.mrf.mxu1 }
  0xd5   :  { %v320_v35 = vmul.f32 %v207_v31, %v207_v31  ;;  %v328_v37 = vmul.f32 %v239_v32, %v239_v32 }
  0xd7   :  { %467 = vadd.xlane.f32.xlu0 %v325_v17  ;;  %453 = vadd.xlane.f32.xlu1 %v318_v18 }
  0xdb   :  { %447 = vadd.xlane.f32.xlu0 %v315_v19  ;;  %469 = vadd.xlane.f32.xlu1 %v326_v20 }
  0xdf   :  { %463 = vadd.xlane.f32.xlu0 %v323_v22  ;;  %449 = vadd.xlane.f32.xlu1 %v316_v23 }
  0xe3   :  { %384 = vadd.xlane.f32.xlu0 %v191_v21  ;;  %465 = vadd.xlane.f32.xlu1 %v324_v25 }
  0xe7   :  { %394 = vadd.xlane.f32.xlu0 %v540_v24  ;;  %396 = vadd.xlane.f32.xlu1 %v541_v28 }
  0xeb   :  { %410 = vadd.xlane.f32.xlu0 %v548_v27  ;;  %412 = vadd.xlane.f32.xlu1 %v549_v30 }
  0xef   :  { %390 = vadd.xlane.f32.xlu0 %v204_v26  ;;  %392 = vadd.xlane.f32.xlu1 %v207_v31 }
  0xf3   :  { %406 = vadd.xlane.f32.xlu0 %v236_v29  ;;  %408 = vadd.xlane.f32.xlu1 %v239_v32 }
  0xf7   :  { %459 = vadd.xlane.f32.xlu0 %v321_v33  ;;  %461 = vadd.xlane.f32.xlu1 %v322_v34 }
  0xfb   :  { %455 = vadd.xlane.f32.xlu0 %v319_v36  ;;  %457 = vadd.xlane.f32.xlu1 %v320_v35 }
  0xff   :  { %471 = vadd.xlane.f32.xlu0 %v327_v38  ;;  %473 = vadd.xlane.f32.xlu1 %v328_v37 }
 0x103   :  { %475 = vadd.xlane.f32.xlu0 %v329_v39  ;;  %477 = vadd.xlane.f32.xlu1 %v330_v40 }
 0x150   :  { %v403_v41 = vpop.xlane.xlu0 %402  ;;  %v387_v42 = vpop.xlane.xlu1 %386 }
 0x151   :  { %425 = vst.msk [vmem:[%s741_s2 + $0x50] sm:$0xff] %vm414_vm1, %v403_v41  ;;  %417 = vst.msk [vmem:[%s741_s2 + $0x10] sm:$0xff] %vm414_vm1, %v387_v42 }
 0x154   :  { %v383_v43 = vpop.xlane.xlu0 %382  ;;  %v389_v44 = vpop.xlane.xlu1 %388 }
 0x155   :  { %415 = vst.msk [vmem:[%s741_s2] sm:$0xff] %vm414_vm1, %v383_v43  ;;  %418 = vst.msk [vmem:[%s741_s2 + $0x18] sm:$0xff] %vm414_vm1, %v389_v44 }
 0x158   :  { %v399_v45 = vpop.xlane.xlu0 %398  ;;  %v405_v46 = vpop.xlane.xlu1 %404 }
 0x159   :  { %423 = vst.msk [vmem:[%s741_s2 + $0x40] sm:$0xff] %vm414_vm1, %v399_v45  ;;  %426 = vst.msk [vmem:[%s741_s2 + $0x58] sm:$0xff] %vm414_vm1, %v405_v46 }
 0x15c   :  { %v452_v47 = vpop.xlane.xlu0 %451  ;;  %v401_v48 = vpop.xlane.xlu1 %400 }
 0x15d   :  { %482 = vst.msk [vmem:[%s741_s2 + $0x10] sm:$0xff] %vm479_vm2, %v452_v47 }
 0x15e   :  { %424 = vst.msk [vmem:[%s741_s2 + $0x48] sm:$0xff] %vm414_vm1, %v401_v48 }
 0x160   :  { %v468_v49 = vpop.xlane.xlu0 %467  ;;  %v454_v50 = vpop.xlane.xlu1 %453 }
 0x161   :  { %490 = vst.msk [vmem:[%s741_s2 + $0x50] sm:$0xff] %vm479_vm2, %v468_v49  ;;  %483 = vst.msk [vmem:[%s741_s2 + $0x18] sm:$0xff] %vm479_vm2, %v454_v50 }
 0x164   :  { %v448_v51 = vpop.xlane.xlu0 %447  ;;  %v470_v52 = vpop.xlane.xlu1 %469 }
 0x165   :  { %480 = vst.msk [vmem:[%s741_s2] sm:$0xff] %vm479_vm2, %v448_v51  ;;  %491 = vst.msk [vmem:[%s741_s2 + $0x58] sm:$0xff] %vm479_vm2, %v470_v52 }
 0x168   :  { %v464_v53 = vpop.xlane.xlu0 %463  ;;  %v450_v54 = vpop.xlane.xlu1 %449 }
 0x169   :  { %488 = vst.msk [vmem:[%s741_s2 + $0x40] sm:$0xff] %vm479_vm2, %v464_v53 }
 0x16c   :  { %v385_v55 = vpop.xlane.xlu0 %384  ;;  %v466_v56 = vpop.xlane.xlu1 %465 }
 0x16d   :  { %416 = vst.msk [vmem:[%s741_s2 + $0x8] sm:$0xff] %vm414_vm1, %v385_v55 }
 0x16e   :  { %489 = vst.msk [vmem:[%s741_s2 + $0x48] sm:$0xff] %vm479_vm2, %v466_v56  ;;  %481 = vst.msk [vmem:[%s741_s2 + $0x8] sm:$0xff] %vm479_vm2, %v450_v54 }
 0x170   :  { %v395_v57 = vpop.xlane.xlu0 %394  ;;  %v397_v58 = vpop.xlane.xlu1 %396 }
 0x171   :  { %421 = vst.msk [vmem:[%s741_s2 + $0x30] sm:$0xff] %vm414_vm1, %v395_v57  ;;  %422 = vst.msk [vmem:[%s741_s2 + $0x38] sm:$0xff] %vm414_vm1, %v397_v58 }
 0x174   :  { %v411_v59 = vpop.xlane.xlu0 %410  ;;  %v413_v60 = vpop.xlane.xlu1 %412 }
 0x175   :  { %429 = vst.msk [vmem:[%s741_s2 + $0x70] sm:$0xff] %vm414_vm1, %v411_v59  ;;  %430 = vst.msk [vmem:[%s741_s2 + $0x78] sm:$0xff] %vm414_vm1, %v413_v60 }
 0x178   :  { %v391_v61 = vpop.xlane.xlu0 %390  ;;  %v393_v62 = vpop.xlane.xlu1 %392 }
 0x179   :  { %419 = vst.msk [vmem:[%s741_s2 + $0x20] sm:$0xff] %vm414_vm1, %v391_v61  ;;  %420 = vst.msk [vmem:[%s741_s2 + $0x28] sm:$0xff] %vm414_vm1, %v393_v62 }
 0x17c   :  { %v407_v63 = vpop.xlane.xlu0 %406  ;;  %v409_v0 = vpop.xlane.xlu1 %408 }
 0x17d   :  { %427 = vst.msk [vmem:[%s741_s2 + $0x60] sm:$0xff] %vm414_vm1, %v407_v63  ;;  %428 = vst.msk [vmem:[%s741_s2 + $0x68] sm:$0xff] %vm414_vm1, %v409_v0 }
 0x180   :  { %v460_v1 = vpop.xlane.xlu0 %459  ;;  %v462_v2 = vpop.xlane.xlu1 %461 }
 0x181   :  { %486 = vst.msk [vmem:[%s741_s2 + $0x30] sm:$0xff] %vm479_vm2, %v460_v1  ;;  %487 = vst.msk [vmem:[%s741_s2 + $0x38] sm:$0xff] %vm479_vm2, %v462_v2 }
 0x184   :  { %v456_v3 = vpop.xlane.xlu0 %455  ;;  %v458_v4 = vpop.xlane.xlu1 %457 }
 0x185   :  { %484 = vst.msk [vmem:[%s741_s2 + $0x20] sm:$0xff] %vm479_vm2, %v456_v3  ;;  %485 = vst.msk [vmem:[%s741_s2 + $0x28] sm:$0xff] %vm479_vm2, %v458_v4 }
 0x188   :  { %v472_v5 = vpop.xlane.xlu0 %471  ;;  %v474_v6 = vpop.xlane.xlu1 %473 }
 0x189   :  { %492 = vst.msk [vmem:[%s741_s2 + $0x60] sm:$0xff] %vm479_vm2, %v472_v5  ;;  %493 = vst.msk [vmem:[%s741_s2 + $0x68] sm:$0xff] %vm479_vm2, %v474_v6 }
 0x18c   :  { %v476_v7 = vpop.xlane.xlu0 %475  ;;  %v478_v8 = vpop.xlane.xlu1 %477 }
 0x18d   :  { %494 = vst.msk [vmem:[%s741_s2 + $0x70] sm:$0xff] %vm479_vm2, %v476_v7  ;;  %495 = vst.msk [vmem:[%s741_s2 + $0x78] sm:$0xff] %vm479_vm2, %v478_v8 }

</bundles_post_ra>
